<compile_context>
chip_gen: v5e
topology: v5e:2x2
jax: 0.10.0
libtpu: 0.0.40
codegen_flags: <defaults>
</compile_context>

<pallas_src>
import functools

import jax
import jax.numpy as jnp
from jax.experimental import pallas as pl
from jax.experimental.pallas import tpu as pltpu

LANES = 128
SUBLANES = 8
MAX_TILE_ROWS = 1024      # (1024,128) f32 block = 512 KiB; 2 inputs x 2 bufs = 2 MiB VMEM
CHUNK_ROWS = 64           # in-kernel fold granularity (keeps intermediates in vregs)
MIN_PALLAS_ELEMS = 1 << 18  # below this, plain XLA beats 1-3 pallas_call launches
N_SPLIT = 2               # leading "parallel" grid axis -> per-TensorCore split on v7x


def _round_up(x, m):
    return ((x + m - 1) // m) * m


def _round_down(x, m):
    return (x // m) * m


def _pow_abs(x, p):
    """|x|**p with compile-time specialization; avoids lax.pow for fractional p."""
    if p == 2.0:
        return x * x
    if p == 1.0:
        return jnp.abs(x)
    if p == 3.0:
        return jnp.abs(x) * x * x
    if p == 4.0:
        xx = x * x
        return xx * xx
    ax = jnp.abs(x)
    # exp(p*log|x|) with a 0 -> 0 guard (EUP ops; no lax.pow lowering needed).
    return jnp.where(ax > 0.0,
                     jnp.exp(jnp.float32(p) * jnp.log(jnp.maximum(ax, 1e-30))),
                     jnp.float32(0.0))


def _stream_cfg(n_elem, min_itemsize):
    """Static tiling/grid configuration for the streaming reductions."""
    sub = {4: SUBLANES, 2: 16, 1: 32}.get(int(min_itemsize), SUBLANES)
    padded = max(_round_up(n_elem, LANES), sub * LANES)   # only up to a 128 multiple
    rows = padded // LANES
    tile_r = min(MAX_TILE_ROWS, _round_down(rows, sub))   # multiple of sub, <= rows
    num_tiles = -(-rows // tile_r)
    coverage = num_tiles * tile_r * LANES
    needs_mask = coverage != n_elem
    rem_last = n_elem - (num_tiles - 1) * tile_r * LANES  # valid elems in last tile (static)
    n_split = N_SPLIT if num_tiles >= N_SPLIT else 1
    tpc = -(-num_tiles // n_split)                        # tiles per core (static)
    return dict(padded=padded, rows=rows, tile_r=tile_r, num_tiles=num_tiles,
                needs_mask=needs_mask, rem_last=rem_last, n_split=n_split, tpc=tpc)


def _as_2d(flat, padded, rows):
    n = flat.shape[0]
    if padded != n:
        # TODO(synk): a zero-copy sub-128 tail reduction would avoid this pad copy
        # for N not a multiple of 128; for multiples of 128 there is no copy at all.
        flat = jnp.pad(flat, (0, padded - n))
    return flat.reshape(rows, LANES)


def _streaming_sums(transform, n_outs, a2d, b2d, params, cfg):
    """Stream (a2d, b2d) tile-by-tile, accumulating sum(transform(...)) into
    per-core (8,128) partial-sum slabs; return the scalar sums."""
    tile_r = cfg["tile_r"]
    num_tiles = cfg["num_tiles"]
    n_split = cfg["n_split"]
    tpc = cfg["tpc"]
    needs_mask = cfg["needs_mask"]
    rem_last = cfg["rem_last"]
    have_params = params is not None
    exact_grid = (tpc * n_split == num_tiles)

    def kernel(*refs):
        if have_params:
            params_ref, a_ref, b_ref = refs[0], refs[1], refs[2]
            o_refs = refs[3:]
        else:
            params_ref = None
            a_ref, b_ref = refs[0], refs[1]
            o_refs = refs[2:]

        c = pl.program_id(0)          # parallel (per-core) axis
        i = pl.program_id(1)          # arbitrary (streaming) axis
        g = c * tpc + i               # global tile index

        @pl.when(i == 0)
        def _init():
            for o in o_refs:
                o[...] = jnp.zeros_like(o)

        def tile_partials(limit):
            # Fold this tile into n_outs (8,128) vreg partials via an unrolled
            # static loop over <=64-row chunks (no large VMEM intermediates).
            parts = [jnp.zeros((SUBLANES, LANES), jnp.float32) for _ in range(n_outs)]
            for off in range(0, tile_r, CHUNK_ROWS):
                if limit is not None and off * LANES >= limit:
                    break                                   # statically dead chunk
                cr = min(CHUNK_ROWS, tile_r - off)
                a = a_ref[off:off + cr, :].astype(jnp.float32)
                b = b_ref[off:off + cr, :].astype(jnp.float32)
                vals = transform(a, b, params_ref)
                if limit is not None and (off + cr) * LANES > limit:
                    rem = limit - off * LANES               # static, < 2**31
                    lin = (jax.lax.broadcasted_iota(jnp.int32, (cr, LANES), 0) * LANES
                           + jax.lax.broadcasted_iota(jnp.int32, (cr, LANES), 1))
                    valid = lin < rem
                    vals = tuple(jnp.where(valid, v, 0.0) for v in vals)
                for j in range(n_outs):
                    parts[j] = parts[j] + vals[j].reshape(
                        cr // SUBLANES, SUBLANES, LANES).sum(axis=0)
            return parts

        def accumulate(parts):
            for o, pt in zip(o_refs, parts):
                o[...] += pt[None, :, :]

        if needs_mask:
            @pl.when(g < num_tiles - 1)           # fast path: no masking at all
            def _full():
                accumulate(tile_partials(None))

            @pl.when(g == num_tiles - 1)          # only the last tile pays the mask
            def _last():
                accumulate(tile_partials(rem_last))
        elif not exact_grid:
            @pl.when(g < num_tiles)               # skip padding grid steps
            def _full():
                accumulate(tile_partials(None))
        else:
            accumulate(tile_partials(None))       # fully unguarded fast path

    if exact_grid:
        def in_idx(c, i):
            return (c * tpc + i, 0)
    else:
        def in_idx(c, i):
            return (jnp.minimum(c * tpc + i, num_tiles - 1), 0)

    in_specs = []
    args = []
    if have_params:
        in_specs.append(pl.BlockSpec(memory_space=pltpu.MemorySpace.SMEM))
        args.append(params)
    in_specs += [pl.BlockSpec((tile_r, LANES), in_idx),
                 pl.BlockSpec((tile_r, LANES), in_idx)]
    args += [a2d, b2d]

    out_shape = tuple(jax.ShapeDtypeStruct((n_split, SUBLANES, LANES), jnp.float32)
                      for _ in range(n_outs))
    out_specs = tuple(pl.BlockSpec((1, SUBLANES, LANES), lambda c, i: (c, 0, 0))
                      for _ in range(n_outs))

    outs = pl.pallas_call(
        kernel,
        out_shape=out_shape,
        grid=(n_split, tpc),
        in_specs=in_specs,
        out_specs=out_specs,
        compiler_params=pltpu.CompilerParams(
            dimension_semantics=("parallel", "arbitrary")),
    )(*args)
    return tuple(jnp.sum(o) for o in outs)


def _ref_norm_in_norm(y, yp, p, q, eps=1e-8, exponent=True):
    """Plain-JAX implementation mirroring the PyTorch code (also the small-N path)."""
    ypred = jnp.ravel(yp).astype(jnp.float32)
    yt = jnp.ravel(y).astype(jnp.float32)
    n = ypred.size
    ypred = ypred - jnp.mean(ypred)
    ypred = ypred / (eps + jnp.sum(jnp.abs(ypred) ** q) ** (1.0 / q))
    yt = yt - jnp.mean(yt)
    yt = yt / (eps + jnp.sum(jnp.abs(yt) ** q) ** (1.0 / q))
    scale = (2.0 ** max(1.0, 1.0 / q)) * (float(n) ** max(0.0, 1.0 / p - 1.0 / q))
    err = ypred - yt
    if p < 1:
        err = err + eps
    loss0 = jnp.sum(jnp.abs(err) ** p) ** (1.0 / p) / scale
    return loss0 ** p if exponent else loss0


def _native_or_f32(x):
    if x.dtype in (jnp.float32, jnp.bfloat16, jnp.float16):
        return x
    return x.astype(jnp.float32)


def norm_in_norm_loss(y, yp, p=2.0, q=2.0, detach=False, exponent=True, eps=1e-8,
                      min_pallas_elems=MIN_PALLAS_ELEMS, fused=None):
    """Forward of NormInNorm(p, q)(y, yp) == norm_loss_with_normalization(yp, y, p, q)."""
    del detach  # detach only affects gradients; forward value is identical
    p = float(p)
    q = float(q)

    n_elem = int(yp.size)
    if n_elem <= 1:
        # torch branch: F.l1_loss(y_pred, y_pred.detach()) == 0
        return jnp.zeros((), jnp.float32)
    if n_elem < min_pallas_elems:
        # Small-N fast path: kernel-launch + scalar-glue overhead dominates.
        return _ref_norm_in_norm(y, yp, p, q, eps=eps, exponent=exponent)

    yp_flat = _native_or_f32(jnp.reshape(yp, (-1,)))
    y_flat = _native_or_f32(jnp.reshape(y, (-1,)))

    cfg = _stream_cfg(n_elem, min(yp_flat.dtype.itemsize, y_flat.dtype.itemsize))
    yp2d = _as_2d(yp_flat, cfg["padded"], cfg["rows"])
    y2d = _as_2d(y_flat, cfg["padded"], cfg["rows"])

    n = float(n_elem)
    scale = (2.0 ** max(1.0, 1.0 / q)) * (n ** max(0.0, 1.0 / p - 1.0 / q))
    if fused is None:
        # Fused (algebraic) path for q==2; disable via fused=False if |mean|>>std
        # makes the uncentered-moment cancellation a concern.
        fused = (q == 2.0)

    if fused and q == 2.0 and p == 2.0:
        # ---- single fused pass: 5 moment accumulators ------------------------
        def t_mom5(a, b, _):
            return (a, b, a * a, b * b, a * b)

        s_p, s_y, s_pp, s_yy, s_py = _streaming_sums(t_mom5, 5, yp2d, y2d, None, cfg)
        css_p = jnp.maximum(s_pp - s_p * s_p / n, 0.0)   # centered Σ(yp-m)^2
        css_y = jnp.maximum(s_yy - s_y * s_y / n, 0.0)
        ccs = s_py - s_p * s_y / n                       # centered Σ(yp-m)(y-m)
        inv_dp = 1.0 / (eps + jnp.sqrt(css_p))
        inv_dy = 1.0 / (eps + jnp.sqrt(css_y))
        sum_err_p = jnp.maximum(
            inv_dp * inv_dp * css_p + inv_dy * inv_dy * css_y
            - 2.0 * inv_dp * inv_dy * ccs, 0.0)
        loss0 = jnp.sqrt(sum_err_p) / scale
        return loss0 ** p if exponent else loss0

    if fused and q == 2.0:
        # ---- pass A: 4 moments -> means + centered 2-norms -------------------
        def t_mom4(a, b, _):
            return (a, b, a * a, b * b)

        s_p, s_y, s_pp, s_yy = _streaming_sums(t_mom4, 4, yp2d, y2d, None, cfg)
        m_p = s_p / n
        m_y = s_y / n
        css_p = jnp.maximum(s_pp - s_p * s_p / n, 0.0)
        css_y = jnp.maximum(s_yy - s_y * s_y / n, 0.0)
        inv_dp = 1.0 / (eps + jnp.sqrt(css_p))
        inv_dy = 1.0 / (eps + jnp.sqrt(css_y))
    else:
        # ---- generic fallback: pass 1 sums, pass 2 centered q-norms ----------
        s_p, s_y = _streaming_sums(lambda a, b, _: (a, b), 2, yp2d, y2d, None, cfg)
        m_p = s_p / n
        m_y = s_y / n

        def t_qnorm(a, b, pr):
            return (_pow_abs(a - pr[0], q), _pow_abs(b - pr[1], q))

        qs_p, qs_y = _streaming_sums(
            t_qnorm, 2, yp2d, y2d, jnp.stack([m_p, m_y]).astype(jnp.float32), cfg)
        inv_dp = 1.0 / (eps + qs_p ** (1.0 / q))
        inv_dy = 1.0 / (eps + qs_y ** (1.0 / q))

    # ---- final pass: p-norm of the normalized error ---------------------------
    def t_err(a, b, pr):
        err = (a - pr[0]) * pr[2] - (b - pr[1]) * pr[3]
        if p < 1.0:
            err = err + eps
        return (_pow_abs(err, p),)

    (ps_err,) = _streaming_sums(
        t_err, 1, yp2d, y2d,
        jnp.stack([m_p, m_y, inv_dp, inv_dy]).astype(jnp.float32), cfg)
    loss0 = (ps_err ** (1.0 / p)) / scale
    return loss0 ** p if exponent else loss0


class NormInNorm:
    """JAX/Pallas counterpart of the PyTorch NormInNorm module (forward only)."""

    def __init__(self, p, q, min_pallas_elems=MIN_PALLAS_ELEMS):
        self.p = p
        self.q = q
        self.min_pallas_elems = min_pallas_elems

    def __call__(self, y, yp):
        return norm_in_norm_loss(y, yp, p=self.p, q=self.q,
                                 min_pallas_elems=self.min_pallas_elems)


if __name__ == "__main__":
    key = jax.random.PRNGKey(0)

    cases = [
        # (shape, dtype, p, q)
        ((2, 4, 16, 16), jnp.float32, 2.0, 2.0),   # fused single-pass (p=q=2)
        ((2, 4, 16, 16), jnp.float32, 1.0, 2.0),   # fused two-pass (q=2)
        ((2, 4, 16, 16), jnp.bfloat16, 2.0, 2.0),  # narrow dtype streamed, cast in-kernel
        ((3, 5, 7, 11), jnp.float32, 2.0, 2.0),    # ragged N=1155 -> pad-to-128 + mask
        ((2, 4, 16, 16), jnp.float32, 2.0, 1.5),   # generic 3-pass path (q != 2)
    ]
    for shape, dt, p_, q_ in cases:
        key, k1, k2 = jax.random.split(key, 3)
        y = jax.random.uniform(k1, shape, dtype=jnp.float32).astype(dt)
        yp = jax.random.uniform(k2, shape, dtype=jnp.float32).astype(dt)
        loss_fn = jax.jit(functools.partial(
            norm_in_norm_loss, p=p_, q=q_, min_pallas_elems=0))  # force the Pallas path
        out = jax.block_until_ready(loss_fn(y, yp))
        ref = jax.block_until_ready(_ref_norm_in_norm(y, yp, p_, q_))
        assert jnp.allclose(out, ref, rtol=1e-4, atol=1e-6), (shape, dt, p_, q_, out, ref)

    # Default module-level dispatch (small inputs take the XLA fast path).
    key, k1, k2 = jax.random.split(key, 3)
    y = jax.random.uniform(k1, (2, 4, 16, 16), dtype=jnp.float32)
    yp = jax.random.uniform(k2, (2, 4, 16, 16), dtype=jnp.float32)
    module = NormInNorm(2.0, 2.0)
    out = jax.block_until_ready(jax.jit(module.__call__)(y, yp))
    ref = jax.block_until_ready(_ref_norm_in_norm(y, yp, 2.0, 2.0))
    assert jnp.allclose(out, ref, rtol=1e-4, atol=1e-6), (out, ref)

    print("KERNEL_OK")
</pallas_src>

<mosaic_0001>
module attributes {stable_mosaic.version = 11 : i64} {
  func.func @kernel(%arg0: i32, %arg1: i32, %arg2: memref<16x128xf32, #tpu.memory_space<vmem>>, %arg3: memref<16x128xf32, #tpu.memory_space<vmem>>, %arg4: memref<1x8x128xf32, #tpu.memory_space<vmem>>, %arg5: memref<1x8x128xf32, #tpu.memory_space<vmem>>, %arg6: memref<1x8x128xf32, #tpu.memory_space<vmem>>, %arg7: memref<1x8x128xf32, #tpu.memory_space<vmem>>, %arg8: memref<1x8x128xf32, #tpu.memory_space<vmem>>) attributes {dimension_semantics = [#tpu.dimension_semantics<parallel>, #tpu.dimension_semantics<arbitrary>], iteration_bounds = array<i64: 1, 1>, scalar_prefetch = 0 : i64, scratch_operands = 0 : i64, tpu.core_type = #tpu.core_type<tc>, window_params = [{transform_indices = @transform_0, window_bounds = array<i64: 16, 128>}, {transform_indices = @transform_1, window_bounds = array<i64: 16, 128>}, {transform_indices = @transform_2, window_bounds = array<i64: 1, 8, 128>}, {transform_indices = @transform_3, window_bounds = array<i64: 1, 8, 128>}, {transform_indices = @transform_4, window_bounds = array<i64: 1, 8, 128>}, {transform_indices = @transform_5, window_bounds = array<i64: 1, 8, 128>}, {transform_indices = @transform_6, window_bounds = array<i64: 1, 8, 128>}]} {
    %c0_i32 = arith.constant 0 : i32
    %0 = arith.cmpi eq, %arg1, %c0_i32 : i32
    %1 = arith.extui %0 : i1 to i32
    %c0_i32_0 = arith.constant 0 : i32
    %2 = arith.cmpi ne, %1, %c0_i32_0 : i32
    scf.if %2 {
      %cst_43 = arith.constant 0.000000e+00 : f32
      %48 = vector.broadcast %cst_43 : f32 to vector<1x8x128xf32>
      %c0_44 = arith.constant 0 : index
      %c0_45 = arith.constant 0 : index
      %c0_46 = arith.constant 0 : index
      %49 = vector.load %arg4[%c0_44, %c0_45, %c0_46] : memref<1x8x128xf32, #tpu.memory_space<vmem>>, vector<1x8x128xf32>
      tpu.vector_store %arg4[%c0_44, %c0_45, %c0_46], %48 {strides = array<i32>} : memref<1x8x128xf32, #tpu.memory_space<vmem>>, vector<1x8x128xf32>,
      %cst_47 = arith.constant 0.000000e+00 : f32
      %50 = vector.broadcast %cst_47 : f32 to vector<1x8x128xf32>
      %c0_48 = arith.constant 0 : index
      %c0_49 = arith.constant 0 : index
      %c0_50 = arith.constant 0 : index
      %51 = vector.load %arg5[%c0_48, %c0_49, %c0_50] : memref<1x8x128xf32, #tpu.memory_space<vmem>>, vector<1x8x128xf32>
      tpu.vector_store %arg5[%c0_48, %c0_49, %c0_50], %50 {strides = array<i32>} : memref<1x8x128xf32, #tpu.memory_space<vmem>>, vector<1x8x128xf32>,
      %cst_51 = arith.constant 0.000000e+00 : f32
      %52 = vector.broadcast %cst_51 : f32 to vector<1x8x128xf32>
      %c0_52 = arith.constant 0 : index
      %c0_53 = arith.constant 0 : index
      %c0_54 = arith.constant 0 : index
      %53 = vector.load %arg6[%c0_52, %c0_53, %c0_54] : memref<1x8x128xf32, #tpu.memory_space<vmem>>, vector<1x8x128xf32>
      tpu.vector_store %arg6[%c0_52, %c0_53, %c0_54], %52 {strides = array<i32>} : memref<1x8x128xf32, #tpu.memory_space<vmem>>, vector<1x8x128xf32>,
      %cst_55 = arith.constant 0.000000e+00 : f32
      %54 = vector.broadcast %cst_55 : f32 to vector<1x8x128xf32>
      %c0_56 = arith.constant 0 : index
      %c0_57 = arith.constant 0 : index
      %c0_58 = arith.constant 0 : index
      %55 = vector.load %arg7[%c0_56, %c0_57, %c0_58] : memref<1x8x128xf32, #tpu.memory_space<vmem>>, vector<1x8x128xf32>
      tpu.vector_store %arg7[%c0_56, %c0_57, %c0_58], %54 {strides = array<i32>} : memref<1x8x128xf32, #tpu.memory_space<vmem>>, vector<1x8x128xf32>,
      %cst_59 = arith.constant 0.000000e+00 : f32
      %56 = vector.broadcast %cst_59 : f32 to vector<1x8x128xf32>
      %c0_60 = arith.constant 0 : index
      %c0_61 = arith.constant 0 : index
      %c0_62 = arith.constant 0 : index
      %57 = vector.load %arg8[%c0_60, %c0_61, %c0_62] : memref<1x8x128xf32, #tpu.memory_space<vmem>>, vector<1x8x128xf32>
      tpu.vector_store %arg8[%c0_60, %c0_61, %c0_62], %56 {strides = array<i32>} : memref<1x8x128xf32, #tpu.memory_space<vmem>>, vector<1x8x128xf32>,
    } else {
    }
    %cst = arith.constant 0.000000e+00 : f32
    %3 = vector.broadcast %cst : f32 to vector<8x128xf32>
    %cst_1 = arith.constant 0.000000e+00 : f32
    %4 = vector.broadcast %cst_1 : f32 to vector<8x128xf32>
    %cst_2 = arith.constant 0.000000e+00 : f32
    %5 = vector.broadcast %cst_2 : f32 to vector<8x128xf32>
    %cst_3 = arith.constant 0.000000e+00 : f32
    %6 = vector.broadcast %cst_3 : f32 to vector<8x128xf32>
    %cst_4 = arith.constant 0.000000e+00 : f32
    %7 = vector.broadcast %cst_4 : f32 to vector<8x128xf32>
    %c0 = arith.constant 0 : index
    %c0_5 = arith.constant 0 : index
    %8 = vector.load %arg2[%c0, %c0_5] : memref<16x128xf32, #tpu.memory_space<vmem>>, vector<16x128xf32>
    %c0_6 = arith.constant 0 : index
    %c0_7 = arith.constant 0 : index
    %9 = vector.load %arg3[%c0_6, %c0_7] : memref<16x128xf32, #tpu.memory_space<vmem>>, vector<16x128xf32>
    %10 = arith.mulf %8, %8 : vector<16x128xf32>
    %11 = arith.mulf %9, %9 : vector<16x128xf32>
    %12 = arith.mulf %8, %9 : vector<16x128xf32>
    %13 = vector.shape_cast %8 : vector<16x128xf32> to vector<2x8x128xf32>
    %cst_8 = arith.constant dense<0.000000e+00> : vector<8x128xf32>
    %14 = vector.multi_reduction <add>, %13, %cst_8 [0] : vector<2x8x128xf32> to vector<8x128xf32>
    %15 = arith.addf %3, %14 : vector<8x128xf32>
    %16 = vector.shape_cast %9 : vector<16x128xf32> to vector<2x8x128xf32>
    %cst_9 = arith.constant dense<0.000000e+00> : vector<8x128xf32>
    %17 = vector.multi_reduction <add>, %16, %cst_9 [0] : vector<2x8x128xf32> to vector<8x128xf32>
    %18 = arith.addf %4, %17 : vector<8x128xf32>
    %19 = vector.shape_cast %10 : vector<16x128xf32> to vector<2x8x128xf32>
    %cst_10 = arith.constant dense<0.000000e+00> : vector<8x128xf32>
    %20 = vector.multi_reduction <add>, %19, %cst_10 [0] : vector<2x8x128xf32> to vector<8x128xf32>
    %21 = arith.addf %5, %20 : vector<8x128xf32>
    %22 = vector.shape_cast %11 : vector<16x128xf32> to vector<2x8x128xf32>
    %cst_11 = arith.constant dense<0.000000e+00> : vector<8x128xf32>
    %23 = vector.multi_reduction <add>, %22, %cst_11 [0] : vector<2x8x128xf32> to vector<8x128xf32>
    %24 = arith.addf %6, %23 : vector<8x128xf32>
    %25 = vector.shape_cast %12 : vector<16x128xf32> to vector<2x8x128xf32>
    %cst_12 = arith.constant dense<0.000000e+00> : vector<8x128xf32>
    %26 = vector.multi_reduction <add>, %25, %cst_12 [0] : vector<2x8x128xf32> to vector<8x128xf32>
    %27 = arith.addf %7, %26 : vector<8x128xf32>
    %c0_13 = arith.constant 0 : index
    %c0_14 = arith.constant 0 : index
    %c0_15 = arith.constant 0 : index
    %28 = vector.load %arg4[%c0_13, %c0_14, %c0_15] : memref<1x8x128xf32, #tpu.memory_space<vmem>>, vector<1x8x128xf32>
    %29 = vector.shape_cast %15 : vector<8x128xf32> to vector<1x8x128xf32>
    %30 = arith.addf %28, %29 : vector<1x8x128xf32>
    %c0_16 = arith.constant 0 : index
    %c0_17 = arith.constant 0 : index
    %c0_18 = arith.constant 0 : index
    %31 = vector.load %arg4[%c0_16, %c0_17, %c0_18] : memref<1x8x128xf32, #tpu.memory_space<vmem>>, vector<1x8x128xf32>
    tpu.vector_store %arg4[%c0_16, %c0_17, %c0_18], %30 {strides = array<i32>} : memref<1x8x128xf32, #tpu.memory_space<vmem>>, vector<1x8x128xf32>,
    %c0_19 = arith.constant 0 : index
    %c0_20 = arith.constant 0 : index
    %c0_21 = arith.constant 0 : index
    %32 = vector.load %arg5[%c0_19, %c0_20, %c0_21] : memref<1x8x128xf32, #tpu.memory_space<vmem>>, vector<1x8x128xf32>
    %33 = vector.shape_cast %18 : vector<8x128xf32> to vector<1x8x128xf32>
    %34 = arith.addf %32, %33 : vector<1x8x128xf32>
    %c0_22 = arith.constant 0 : index
    %c0_23 = arith.constant 0 : index
    %c0_24 = arith.constant 0 : index
    %35 = vector.load %arg5[%c0_22, %c0_23, %c0_24] : memref<1x8x128xf32, #tpu.memory_space<vmem>>, vector<1x8x128xf32>
    tpu.vector_store %arg5[%c0_22, %c0_23, %c0_24], %34 {strides = array<i32>} : memref<1x8x128xf32, #tpu.memory_space<vmem>>, vector<1x8x128xf32>,
    %c0_25 = arith.constant 0 : index
    %c0_26 = arith.constant 0 : index
    %c0_27 = arith.constant 0 : index
    %36 = vector.load %arg6[%c0_25, %c0_26, %c0_27] : memref<1x8x128xf32, #tpu.memory_space<vmem>>, vector<1x8x128xf32>
    %37 = vector.shape_cast %21 : vector<8x128xf32> to vector<1x8x128xf32>
    %38 = arith.addf %36, %37 : vector<1x8x128xf32>
    %c0_28 = arith.constant 0 : index
    %c0_29 = arith.constant 0 : index
    %c0_30 = arith.constant 0 : index
    %39 = vector.load %arg6[%c0_28, %c0_29, %c0_30] : memref<1x8x128xf32, #tpu.memory_space<vmem>>, vector<1x8x128xf32>
    tpu.vector_store %arg6[%c0_28, %c0_29, %c0_30], %38 {strides = array<i32>} : memref<1x8x128xf32, #tpu.memory_space<vmem>>, vector<1x8x128xf32>,
    %c0_31 = arith.constant 0 : index
    %c0_32 = arith.constant 0 : index
    %c0_33 = arith.constant 0 : index
    %40 = vector.load %arg7[%c0_31, %c0_32, %c0_33] : memref<1x8x128xf32, #tpu.memory_space<vmem>>, vector<1x8x128xf32>
    %41 = vector.shape_cast %24 : vector<8x128xf32> to vector<1x8x128xf32>
    %42 = arith.addf %40, %41 : vector<1x8x128xf32>
    %c0_34 = arith.constant 0 : index
    %c0_35 = arith.constant 0 : index
    %c0_36 = arith.constant 0 : index
    %43 = vector.load %arg7[%c0_34, %c0_35, %c0_36] : memref<1x8x128xf32, #tpu.memory_space<vmem>>, vector<1x8x128xf32>
    tpu.vector_store %arg7[%c0_34, %c0_35, %c0_36], %42 {strides = array<i32>} : memref<1x8x128xf32, #tpu.memory_space<vmem>>, vector<1x8x128xf32>,
    %c0_37 = arith.constant 0 : index
    %c0_38 = arith.constant 0 : index
    %c0_39 = arith.constant 0 : index
    %44 = vector.load %arg8[%c0_37, %c0_38, %c0_39] : memref<1x8x128xf32, #tpu.memory_space<vmem>>, vector<1x8x128xf32>
    %45 = vector.shape_cast %27 : vector<8x128xf32> to vector<1x8x128xf32>
    %46 = arith.addf %44, %45 : vector<1x8x128xf32>
    %c0_40 = arith.constant 0 : index
    %c0_41 = arith.constant 0 : index
    %c0_42 = arith.constant 0 : index
    %47 = vector.load %arg8[%c0_40, %c0_41, %c0_42] : memref<1x8x128xf32, #tpu.memory_space<vmem>>, vector<1x8x128xf32>
    tpu.vector_store %arg8[%c0_40, %c0_41, %c0_42], %46 {strides = array<i32>} : memref<1x8x128xf32, #tpu.memory_space<vmem>>, vector<1x8x128xf32>,
    return
  }
  func.func @transform_0(%arg0: i32, %arg1: i32) -> (i32, i32) {
    %c1_i32 = arith.constant 1 : i32
    %0 = arith.muli %arg0, %c1_i32 : i32
    %1 = arith.addi %0, %arg1 : i32
    %c0_i32 = arith.constant 0 : i32
    %c0_i32_0 = arith.constant 0 : i32
    return %1, %c0_i32 : i32, i32
  }
  func.func @transform_1(%arg0: i32, %arg1: i32) -> (i32, i32) {
    %c1_i32 = arith.constant 1 : i32
    %0 = arith.muli %arg0, %c1_i32 : i32
    %1 = arith.addi %0, %arg1 : i32
    %c0_i32 = arith.constant 0 : i32
    %c0_i32_0 = arith.constant 0 : i32
    return %1, %c0_i32 : i32, i32
  }
  func.func @transform_2(%arg0: i32, %arg1: i32) -> (i32, i32, i32) {
    %c0_i32 = arith.constant 0 : i32
    %c0_i32_0 = arith.constant 0 : i32
    %c0_i32_1 = arith.constant 0 : i32
    return %arg0, %c0_i32, %c0_i32_0 : i32, i32, i32
  }
  func.func @transform_3(%arg0: i32, %arg1: i32) -> (i32, i32, i32) {
    %c0_i32 = arith.constant 0 : i32
    %c0_i32_0 = arith.constant 0 : i32
    %c0_i32_1 = arith.constant 0 : i32
    return %arg0, %c0_i32, %c0_i32_0 : i32, i32, i32
  }
  func.func @transform_4(%arg0: i32, %arg1: i32) -> (i32, i32, i32) {
    %c0_i32 = arith.constant 0 : i32
    %c0_i32_0 = arith.constant 0 : i32
    %c0_i32_1 = arith.constant 0 : i32
    return %arg0, %c0_i32, %c0_i32_0 : i32, i32, i32
  }
  func.func @transform_5(%arg0: i32, %arg1: i32) -> (i32, i32, i32) {
    %c0_i32 = arith.constant 0 : i32
    %c0_i32_0 = arith.constant 0 : i32
    %c0_i32_1 = arith.constant 0 : i32
    return %arg0, %c0_i32, %c0_i32_0 : i32, i32, i32
  }
  func.func @transform_6(%arg0: i32, %arg1: i32) -> (i32, i32, i32) {
    %c0_i32 = arith.constant 0 : i32
    %c0_i32_0 = arith.constant 0 : i32
    %c0_i32_1 = arith.constant 0 : i32
    return %arg0, %c0_i32, %c0_i32_0 : i32, i32, i32
  }
}

</mosaic_0001>

<bundles_post_ra>
// kernel: norm_in_norm_loss.1
= control target key start
LH: loop header
LB: loop body
LE: loop exit
PB: predicated region body
PF: predicated region fallthrough
CT: control target
= control target key end

     0   :  { %s199_s0 = inlined_call_operand.vmem [shape: f32[16,128], index: 0, kind: input, shape index: {}]   ;;  %s200_s1 = inlined_call_operand.vmem [shape: f32[16,128], index: 1, kind: input, shape index: {}]   ;;  %s201_s2 = inlined_call_operand.vmem [shape: f32[1,8,128], index: 2, kind: output, shape index: {0}]   ;;  %s202_s3 = inlined_call_operand.vmem [shape: f32[1,8,128], index: 3, kind: output, shape index: {1}]   ;;  %s203_s4 = inlined_call_operand.vmem [shape: f32[1,8,128], index: 4, kind: output, shape index: {2}]   ;;  %s204_s5 = inlined_call_operand.vmem [shape: f32[1,8,128], index: 5, kind: output, shape index: {3}]   ;;  %s205_s6 = inlined_call_operand.vmem [shape: f32[1,8,128], index: 6, kind: output, shape index: {4}]  }
   0x1   :  { %v69_v0 = vld [vmem:[%s199_s0] sm:$0xff]  ;;  %v70_v1 = vld [vmem:[%s199_s0 + $0x8] sm:$0xff] }
   0x2   :  { %v71_v2 = vld [vmem:[%s200_s1] sm:$0xff]  ;;  %v79_v3 = vadd.f32 %v70_v1, %v69_v0  ;;  %v72_v4 = vld [vmem:[%s200_s1 + $0x8] sm:$0xff]  ;;  %v73_v5 = vmul.f32 %v69_v0, %v69_v0  ;;  %v74_v6 = vmul.f32 %v70_v1, %v70_v1 }
   0x3   :  { %v75_v7 = vmul.f32 %v71_v2, %v71_v2  ;;  %v81_v8 = vadd.f32 %v72_v4, %v71_v2  ;;  %v76_v9 = vmul.f32 %v72_v4, %v72_v4  ;;  %v77_v10 = vmul.f32 %v71_v2, %v69_v0 }
   0x4   :  { %v78_v11 = vmul.f32 %v72_v4, %v70_v1  ;;  %v83_v12 = vadd.f32 %v74_v6, %v73_v5  ;;  %91 = vst [vmem:[%s201_s2] sm:$0xff] %v79_v3 }
   0x5   :  { %v85_v13 = vadd.f32 %v76_v9, %v75_v7  ;;  %94 = vst [vmem:[%s202_s3] sm:$0xff] %v81_v8 }
   0x6   :  { %v87_v14 = vadd.f32 %v78_v11, %v77_v10  ;;  %97 = vst [vmem:[%s203_s4] sm:$0xff] %v83_v12 }
   0x7   :  { %100 = vst [vmem:[%s204_s5] sm:$0xff] %v85_v13 }
   0x8   :  { %103 = vst [vmem:[%s205_s6] sm:$0xff] %v87_v14 }

</bundles_post_ra>
